<compile_context>
chip_gen: v5e
topology: v5e:2x2
jax: 0.10.0
libtpu: 0.0.40
codegen_flags: <defaults>
</compile_context>

<pallas_src>
import numpy as np
import jax
import jax.numpy as jnp
from jax.experimental import pallas as pl
from jax.experimental.pallas import tpu as pltpu


def _poi2d_kernel(f0_ref, f1_ref, out_ref):
    # f0_ref: (TM, 1)  -> -a * sum over group-0 quad points (rows of the tile)
    # f1_ref: (1, TN)  -> -a * sum over group-1 quad points (cols of the tile)
    # out_ref: (TM, TN)
    out_ref[...] = (f0_ref[...] + f1_ref[...]).astype(out_ref.dtype)


def _round_up(x, m):
    return (x + m - 1) // m * m


# Below this output size a single block + one grid step is cheapest.
_FAST_PATH_MAX_OUT_BYTES = 2 * 1024 * 1024
# Target tile: 512 * 2048 * 4 B = 4 MiB f32 (8 MiB double-buffered output).
# Fits v5e's 16 MiB scoped VMEM default; tiny vs v6e/v7x's 32 MiB scoped.
_TM = 512
_TN = 2048


def poi2d_with_a_tensor_cat(quad_x, param_a, tensor_dim, quad_concat,
                            out_dtype=jnp.float32):
    """quad_x: list of arrays, quad_x[k] has shape (dim_k, Q); only column 0 is used."""
    assert len(tensor_dim) == 2 and len(quad_concat) == 2, "2-D case (Poi2d)"
    n0, n1 = int(tensor_dim[0]), int(tensor_dim[1])

    a = jnp.asarray(param_a, jnp.float32)

    # Hoisted per-axis reductions (tiny O(N0+N1) XLA work), -a folded in.
    def _axis_sum(idx_list):
        s = None
        for k in idx_list:
            xk = quad_x[k][:, 0].astype(jnp.float32)
            t = xk * xk - xk
            s = t if s is None else s + t
        return s

    f0 = (-a * _axis_sum(quad_concat[0])).reshape(n0, 1)   # (N0, 1)
    f1 = (-a * _axis_sum(quad_concat[1])).reshape(1, n1)   # (1, N1)

    out_shape = jax.ShapeDtypeStruct((n0, n1), out_dtype)
    out_bytes = n0 * n1 * jnp.dtype(out_dtype).itemsize

    if out_bytes <= _FAST_PATH_MAX_OUT_BYTES:
        # ---- Fast path: whole output in one block, one writeback DMA. ----
        return pl.pallas_call(
            _poi2d_kernel,
            out_shape=out_shape,
            grid=(1,),
            in_specs=[
                pl.BlockSpec((n0, 1), lambda i: (0, 0)),
                pl.BlockSpec((1, n1), lambda i: (0, 0)),
            ],
            out_specs=pl.BlockSpec((n0, n1), lambda i: (0, 0)),
            compiler_params=pltpu.CompilerParams(
                dimension_semantics=("arbitrary",)),
        )(f0, f1)

    # ---- Tiled path: balanced, lane-dense output tiles, pipelined writeback. ----
    gi = pl.cdiv(n0, _TM)
    gj = pl.cdiv(n1, _TN)
    if gi * gj == 1:
        # Keep >= 2 tiles so v7x megacore can shard work across its 2 TCs.
        if n1 >= 256:
            gj = 2
        elif n0 >= 16:
            gi = 2
    # Balanced tile sizes (avoid a nearly-empty / heavily masked edge tile).
    tm = _round_up(pl.cdiv(n0, gi), 8)      # sublane multiple
    tn = _round_up(pl.cdiv(n1, gj), 128)    # lane-dense stores
    grid = (pl.cdiv(n0, tm), pl.cdiv(n1, tn))

    return pl.pallas_call(
        _poi2d_kernel,
        out_shape=out_shape,
        grid=grid,
        in_specs=[
            pl.BlockSpec((tm, 1), lambda i, j: (i, 0)),   # group-0 rows for tile i
            pl.BlockSpec((1, tn), lambda i, j: (0, j)),   # group-1 cols for tile j
        ],
        out_specs=pl.BlockSpec((tm, tn), lambda i, j: (i, j)),
        compiler_params=pltpu.CompilerParams(
            # Both output-tile axes are independent -> megacore shards them on
            # v7x; harmless no-op on single-TC v5e/v6e.
            dimension_semantics=("parallel", "parallel")),
    )(f0, f1)


def _reference(quad_x, param_a, quad_concat):
    f0 = sum(quad_x[k][:, 0] ** 2 - quad_x[k][:, 0] for k in quad_concat[0])
    f1 = sum(quad_x[k][:, 0] ** 2 - quad_x[k][:, 0] for k in quad_concat[1])
    return -param_a * (f0[:, None] + f1[None, :])


if __name__ == "__main__":
    key = jax.random.PRNGKey(0)
    keys = jax.random.split(key, 4)
    param_a = jnp.float32(1.5)

    # --- Case 1: small (16, 128) output, single-block fast path,
    #     multi-member quadrature group on axis 0 (quad_concat=[[0,2],[1]]). ---
    tensor_dim_s = (16, 128)
    quad_concat_s = [[0, 2], [1]]
    quad_x_s = [
        jax.random.uniform(keys[0], (tensor_dim_s[0], 2), dtype=jnp.float32),
        jax.random.uniform(keys[1], (tensor_dim_s[1], 2), dtype=jnp.float32),
        jax.random.uniform(keys[2], (tensor_dim_s[0], 2), dtype=jnp.float32),
    ]
    out_s = poi2d_with_a_tensor_cat(quad_x_s, param_a, tensor_dim_s, quad_concat_s)
    out_s = jax.block_until_ready(out_s)
    ref_s = _reference(quad_x_s, float(param_a), quad_concat_s)
    assert out_s.shape == tuple(tensor_dim_s)
    np.testing.assert_allclose(np.asarray(out_s), np.asarray(ref_s), rtol=1e-5, atol=1e-6)

    # --- Case 2: larger (272, 2176) output -> 2-D tiled, balanced ragged-edge
    #     path (grid (1,2), tn=1152) exercising the pipelined writeback. ---
    tensor_dim_l = (272, 2176)
    quad_concat_l = [[0], [1]]
    quad_x_l = [
        jax.random.uniform(keys[3], (tensor_dim_l[0], 2), dtype=jnp.float32),
        jax.random.uniform(keys[0], (tensor_dim_l[1], 2), dtype=jnp.float32),
    ]
    out_l = poi2d_with_a_tensor_cat(quad_x_l, param_a, tensor_dim_l, quad_concat_l)
    out_l = jax.block_until_ready(out_l)
    ref_l = _reference(quad_x_l, float(param_a), quad_concat_l)
    assert out_l.shape == tuple(tensor_dim_l)
    np.testing.assert_allclose(np.asarray(out_l), np.asarray(ref_l), rtol=1e-5, atol=1e-6)

    # --- Case 3: output exactly one 4 MiB tile (512, 2048) -> forced 2-way
    #     lane split so the grid product stays >= 2 (v7x megacore). ---
    tensor_dim_m = (512, 2048)
    quad_concat_m = [[0], [1]]
    quad_x_m = [
        jax.random.uniform(keys[1], (tensor_dim_m[0], 2), dtype=jnp.float32),
        jax.random.uniform(keys[2], (tensor_dim_m[1], 2), dtype=jnp.float32),
    ]
    out_m = poi2d_with_a_tensor_cat(quad_x_m, param_a, tensor_dim_m, quad_concat_m)
    out_m = jax.block_until_ready(out_m)
    ref_m = _reference(quad_x_m, float(param_a), quad_concat_m)
    assert out_m.shape == tuple(tensor_dim_m)
    np.testing.assert_allclose(np.asarray(out_m), np.asarray(ref_m), rtol=1e-5, atol=1e-6)

    # --- Case 4: optional bf16 output (halves store bytes on the store-bound path). ---
    out_bf16 = poi2d_with_a_tensor_cat(quad_x_l, param_a, tensor_dim_l, quad_concat_l,
                                       out_dtype=jnp.bfloat16)
    out_bf16 = jax.block_until_ready(out_bf16)
    np.testing.assert_allclose(np.asarray(out_bf16, dtype=np.float32),
                               np.asarray(ref_l), rtol=2e-2, atol=2e-2)

    print("KERNEL_OK")
</pallas_src>

<mosaic_0001>
module attributes {stable_mosaic.version = 11 : i64} {
  func.func @_poi2d_kernel(%arg0: i32, %arg1: memref<16x1xf32, #tpu.memory_space<vmem>>, %arg2: memref<1x128xf32, #tpu.memory_space<vmem>>, %arg3: memref<16x128xf32, #tpu.memory_space<vmem>>) attributes {dimension_semantics = [#tpu.dimension_semantics<arbitrary>], iteration_bounds = array<i64: 1>, scalar_prefetch = 0 : i64, scratch_operands = 0 : i64, tpu.core_type = #tpu.core_type<tc>, window_params = [{pipeline_mode = #tpu.pipeline_mode<synchronous>, transform_indices = @transform_0, window_bounds = array<i64: 16, 1>}, {pipeline_mode = #tpu.pipeline_mode<synchronous>, transform_indices = @transform_1, window_bounds = array<i64: 1, 128>}, {pipeline_mode = #tpu.pipeline_mode<synchronous>, transform_indices = @transform_2, window_bounds = array<i64: 16, 128>}]} {
    %c0 = arith.constant 0 : index
    %c0_0 = arith.constant 0 : index
    %0 = vector.load %arg1[%c0, %c0_0] : memref<16x1xf32, #tpu.memory_space<vmem>>, vector<16x1xf32>
    %c0_1 = arith.constant 0 : index
    %c0_2 = arith.constant 0 : index
    %1 = vector.load %arg2[%c0_1, %c0_2] : memref<1x128xf32, #tpu.memory_space<vmem>>, vector<1x128xf32>
    %2 = vector.broadcast %0 : vector<16x1xf32> to vector<16x128xf32>
    %3 = vector.broadcast %1 : vector<1x128xf32> to vector<16x128xf32>
    %4 = arith.addf %2, %3 : vector<16x128xf32>
    %c0_3 = arith.constant 0 : index
    %c0_4 = arith.constant 0 : index
    %5 = vector.load %arg3[%c0_3, %c0_4] : memref<16x128xf32, #tpu.memory_space<vmem>>, vector<16x128xf32>
    tpu.vector_store %arg3[%c0_3, %c0_4], %4 {strides = array<i32>} : memref<16x128xf32, #tpu.memory_space<vmem>>, vector<16x128xf32>,
    return
  }
  func.func @transform_0(%arg0: i32) -> (i32, i32) {
    %c0_i32 = arith.constant 0 : i32
    %c0_i32_0 = arith.constant 0 : i32
    %c0_i32_1 = arith.constant 0 : i32
    return %c0_i32, %c0_i32_0 : i32, i32
  }
  func.func @transform_1(%arg0: i32) -> (i32, i32) {
    %c0_i32 = arith.constant 0 : i32
    %c0_i32_0 = arith.constant 0 : i32
    %c0_i32_1 = arith.constant 0 : i32
    return %c0_i32, %c0_i32_0 : i32, i32
  }
  func.func @transform_2(%arg0: i32) -> (i32, i32) {
    %c0_i32 = arith.constant 0 : i32
    %c0_i32_0 = arith.constant 0 : i32
    %c0_i32_1 = arith.constant 0 : i32
    return %c0_i32, %c0_i32_0 : i32, i32
  }
}

</mosaic_0001>

<bundles_post_ra>
// kernel: tpu_custom_call.1
= control target key start
LH: loop header
LB: loop body
LE: loop exit
PB: predicated region body
PF: predicated region fallthrough
CT: control target
= control target key end

     0   :  { %v82_v1 = vmov 0   ;;  %s113_s0 = inlined_call_operand.vmem [shape: f32[16,1], index: 0, kind: input, shape index: {}]   ;;  %s114_s1 = inlined_call_operand.vmem [shape: f32[1,128], index: 1, kind: input, shape index: {}]   ;;  %s115_s2 = inlined_call_operand.hbm [shape: f32[16,128], index: 2, kind: output, shape index: {}]  }
   0x1   :  { %v12_v0 = vld [vmem:[%s113_s0] sm:$0xff]  ;;  %54 = vset.pattern.permute.xlu0 %v82_v1 }
   0x2   :  { %7 = vsyncpa [#allocation3], 0  ;;  %17 = vperm.xlu0 %54, %v12_v0   ;;  %v13_v2 = vld [vmem:[%s113_s0 + $0x8] sm:$0xff]  ;;  %v55_v3 = vld [vmem:[%s114_s1] ss:$0 sm:$0xff]  ;;  %s83_s15 = smov [#allocation2]  }
   0x3   :  { %s36_s16 = sshll.u32 %s83_s15, 4  ;;  %s38_s19 = sshll.u32 %s115_s2, 4  ;;  %s37_s16 = int_to_ptr.vmem [resolvable:$true] %s36_s16  ;;  %s39_s19 = int_to_ptr.hbm [resolvable:$true] %s38_s19 }
   0x4   :  { %s84_s0 = smov 128   ;;  %s85_s20 = smov 8  }
   0xa   :  { %22 = vperm.xlu0 %54, %v13_v2  }
  0x74   :  { %v18_v4 = vpop.permute.xlu0 %17 }
  0x75   :  { %v28_v5 = vadd.f32 %v55_v3, %v18_v4 }
  0x77   :  { %30 = vst [vmem:[#allocation2] sm:$0xff] %v28_v5 }
  0x7c   :  { %v23_v6 = vpop.permute.xlu0 %22 }
  0x7d   :  { %v29_v7 = vadd.f32 %v55_v3, %v23_v6 }
  0x7f   :  { %31 = vst [vmem:[#allocation2 + $0x8] sm:$0xff] %v29_v7 }
  0x80   :  { %44 = dma.vmem_to_hbm [thread:$0]  %s37_s16, 256, %s39_s19, [#allocation3], %s84_s0, %s84_s0, %s85_s20  }
  0x81   :  { %80 = dma.done.wait [#allocation3], 256  }
  0x82   :  { %81 = vsyncadd [#allocation3], 4294967040 }
  0x83   :  { %49 = vsyncpa [#allocation3], 1 }

</bundles_post_ra>
